<compile_context>
chip_gen: v6e
topology: v6e:2x2x1
jax: 0.10.0
libtpu: 0.0.40
codegen_flags: <defaults>
</compile_context>

<pallas_src>
import math

import jax
import jax.numpy as jnp
from jax.experimental import pallas as pl
from jax.experimental.pallas import tpu as pltpu

WEIGHT_ABS = 0.6        # importance of the absolute loss term (loss='l2')
N_SPLIT = 2             # leading "parallel" grid axis (v7x megacore); harmless on 1-TC chips
DEFAULT_ROW_TILE = 2048  # rows (= frames*batch) per grid step; ~6 MiB VMEM incl. padding


def _round_up(x, m):
    return ((x + m - 1) // m) * m


def _masked_motion_loss_kernel(pred_ref, tgt_ref, mask_ref, oht_ref, q_ref,
                               abs_ref, rel_ref, len_ref):
    """One row-tile: squared error (abs + root-relative), masked, reduced to
    per-batch partial sums via MXU matmuls, accumulated into the output refs."""
    i = pl.program_id(1)  # inner ("arbitrary") tile index within this split

    @pl.when(i == 0)
    def _init():
        abs_ref[...] = jnp.zeros_like(abs_ref)
        rel_ref[...] = jnp.zeros_like(rel_ref)
        len_ref[...] = jnp.zeros_like(len_ref)

    p = pred_ref[...]            # (R, JC) f32
    g = tgt_ref[...]             # (R, JC) f32
    m = mask_ref[...]            # (R, 1)  f32 (0 for padded / invalid frames)
    oht = oht_ref[...]           # (B, R)  constant one-hot: row r -> batch r % B

    diff = p - g                                   # VPU
    sq_abs = diff * diff                           # VPU
    # Root-relative term via MXU: diff_rel[:, j*C+c] = diff[:, j*C+c] - diff[:, c]
    diff_rel = jnp.dot(diff, q_ref[...], preferred_element_type=jnp.float32)
    sq_rel = diff_rel * diff_rel                   # VPU

    msq_abs = sq_abs * m                           # mask broadcast over JC columns
    msq_rel = sq_rel * m

    # Per-batch masked partial sums (keep JC axis; /J and JC-sum happen in the wrapper).
    abs_ref[...] += jnp.dot(oht, msq_abs, preferred_element_type=jnp.float32)  # (B, JC)
    rel_ref[...] += jnp.dot(oht, msq_rel, preferred_element_type=jnp.float32)  # (B, JC)
    len_ref[...] += jnp.dot(oht, m, preferred_element_type=jnp.float32)        # (B, 1)


def masked_motion_loss(predicted, target, masking, *,
                       weight_abs=WEIGHT_ABS, row_tile=DEFAULT_ROW_TILE):
    """predicted/target: (T, B, J, C), masking: (T, B) -> scalar f32 loss."""
    T, B, J, C = predicted.shape
    JC = J * C
    rows = T * B

    pred = predicted.astype(jnp.float32).reshape(rows, JC)   # free reshape
    tgt = target.astype(jnp.float32).reshape(rows, JC)
    mask = masking.astype(jnp.float32).reshape(rows, 1)

    # Tile sizing: multiple of 8 (sublanes) and of B (so row % B is tile-invariant).
    unit = math.lcm(8, B)
    rt = min(_round_up(row_tile, unit), _round_up(pl.cdiv(rows, N_SPLIT), unit))
    rows_pad = _round_up(rows, N_SPLIT * rt)
    pad = rows_pad - rows
    if pad:
        # Zero-pad data and mask: padded frames have mask=0 -> contribute nothing.
        pred = jnp.pad(pred, ((0, pad), (0, 0)))
        tgt = jnp.pad(tgt, ((0, pad), (0, 0)))
        mask = jnp.pad(mask, ((0, pad), (0, 0)))
    tps = rows_pad // (N_SPLIT * rt)   # tiles per parallel split

    # Constant one-hot (B, rt): row r (within a tile) belongs to batch r % B.
    r_idx = jnp.arange(rt, dtype=jnp.int32)
    oht = (r_idx[None, :] % B == jnp.arange(B, dtype=jnp.int32)[:, None]).astype(jnp.float32)
    # Constant Q = I - P, P[k, m] = 1 iff k == m % C (broadcast root joint to all joints).
    cols = jnp.arange(JC, dtype=jnp.int32)
    p_mat = (cols[:, None] == (cols % C)[None, :]).astype(jnp.float32)
    q_mat = jnp.eye(JC, dtype=jnp.float32) - p_mat

    out_abs, out_rel, out_len = pl.pallas_call(
        _masked_motion_loss_kernel,
        out_shape=(
            jax.ShapeDtypeStruct((N_SPLIT, B, JC), jnp.float32),  # raw abs sums
            jax.ShapeDtypeStruct((N_SPLIT, B, JC), jnp.float32),  # raw rel sums
            jax.ShapeDtypeStruct((N_SPLIT, B, 1), jnp.float32),   # mask lengths
        ),
        grid_spec=pltpu.PrefetchScalarGridSpec(
            num_scalar_prefetch=0,
            grid=(N_SPLIT, tps),
            in_specs=[
                pl.BlockSpec((rt, JC), lambda s, i: (s * tps + i, 0)),  # pred rows
                pl.BlockSpec((rt, JC), lambda s, i: (s * tps + i, 0)),  # target rows
                pl.BlockSpec((rt, 1), lambda s, i: (s * tps + i, 0)),   # mask rows
                pl.BlockSpec((B, rt), lambda s, i: (0, 0)),             # one-hot (resident)
                pl.BlockSpec((JC, JC), lambda s, i: (0, 0)),            # Q matrix (resident)
            ],
            out_specs=(
                pl.BlockSpec((None, B, JC), lambda s, i: (s, 0, 0)),
                pl.BlockSpec((None, B, JC), lambda s, i: (s, 0, 0)),
                pl.BlockSpec((None, B, 1), lambda s, i: (s, 0, 0)),
            ),
        ),
        compiler_params=pltpu.CompilerParams(
            dimension_semantics=("parallel", "arbitrary"),
            vmem_limit_bytes=32 * 1024 * 1024,   # fits all generations incl. v7x (64 MiB phys)
        ),
    )(pred, tgt, mask, oht, q_mat)

    # ---- tiny O(B) finalisation in plain JAX (hoisted out of the hot loop) ----
    acc_abs = jnp.sum(out_abs, axis=0)            # (B, JC) sum over parallel splits
    acc_rel = jnp.sum(out_rel, axis=0)
    lengths = jnp.sum(out_len, axis=0)[:, 0]      # (B,) per-sequence valid-frame counts

    ts_abs = jnp.sum(acc_abs, axis=1) / J         # temporal_sum (joint mean applied once)
    ts_rel = jnp.sum(acc_rel, axis=1) / J
    len_abs = jnp.where(ts_abs == 0.0, 1.0, lengths)
    len_rel = jnp.where(ts_rel == 0.0, 1.0, lengths)

    denom = jnp.sum(masking.astype(jnp.float32)[0, :])   # torch.sum(masking, dim=1)[0]
    loss_abs = jnp.sum(ts_abs / len_abs) / denom
    loss_rel = jnp.sum(ts_rel / len_rel) / denom
    return weight_abs * loss_abs + (1.0 - weight_abs) * loss_rel


def _reference_loss(predicted, target, masking, weight_abs=WEIGHT_ABS):
    """Pure-JAX reference mirroring the PyTorch module (l2, abs input mode)."""
    def helper(p, t, m):
        point = jnp.sum((p - t) ** 2, axis=3)
        pose = jnp.mean(point, axis=2)
        tsum = jnp.sum(pose * m, axis=0)
        lengths = jnp.sum(m, axis=0)
        lengths = jnp.where(tsum == 0.0, 1.0, lengths)
        seq = tsum / lengths
        return jnp.sum(seq) / jnp.sum(m, axis=1)[0]

    loss_abs = helper(predicted, target, masking)
    p_rel = predicted - predicted[:, :, 0:1, :]
    t_rel = target - target[:, :, 0:1, :]
    loss_rel = helper(p_rel, t_rel, masking)
    return weight_abs * loss_abs + (1.0 - weight_abs) * loss_rel


if __name__ == "__main__":
    def make_inputs(T, B, J, C, lengths, seed=0):
        key = jax.random.PRNGKey(seed)
        k_p, k_t = jax.random.split(key)
        predicted = jax.random.normal(k_p, (T, B, J, C), dtype=jnp.float32)
        target = jax.random.normal(k_t, (T, B, J, C), dtype=jnp.float32)
        lengths = jnp.array(lengths, dtype=jnp.int32)
        masking = (jnp.arange(T, dtype=jnp.int32)[:, None]
                   < lengths[None, :]).astype(jnp.float32)   # (T, B)
        return predicted, target, masking

    # Case 1: tiny shapes (seq=8, batch=2, joints=16, coords=3).
    p1, t1, m1 = make_inputs(8, 2, 16, 3, [8, 5], seed=0)
    loss1 = jax.block_until_ready(masked_motion_loss(p1, t1, m1))
    ref1 = _reference_loss(p1, t1, m1)
    assert jnp.allclose(loss1, ref1, rtol=1e-4, atol=1e-6), (loss1, ref1)

    # Case 2: longer, odd-length sequence with a small explicit row_tile ->
    # exercises zero-padding of the last tile and multi-tile accumulation
    # across the inner ("arbitrary") grid axis on both parallel splits.
    p2, t2, m2 = make_inputs(97, 2, 16, 3, [97, 60], seed=1)
    loss2 = jax.block_until_ready(masked_motion_loss(p2, t2, m2, row_tile=32))
    ref2 = _reference_loss(p2, t2, m2)
    assert jnp.allclose(loss2, ref2, rtol=1e-4, atol=1e-6), (loss2, ref2)

    print("KERNEL_OK")
</pallas_src>

<mosaic_0001>
module attributes {stable_mosaic.version = 11 : i64} {
  func.func @_masked_motion_loss_kernel(%arg0: i32, %arg1: i32, %arg2: memref<8x48xf32, #tpu.memory_space<vmem>>, %arg3: memref<8x48xf32, #tpu.memory_space<vmem>>, %arg4: memref<8x1xf32, #tpu.memory_space<vmem>>, %arg5: memref<2x8xf32, #tpu.memory_space<vmem>>, %arg6: memref<48x48xf32, #tpu.memory_space<vmem>>, %arg7: memref<1x2x48xf32, #tpu.memory_space<vmem>>, %arg8: memref<1x2x48xf32, #tpu.memory_space<vmem>>, %arg9: memref<1x2x1xf32, #tpu.memory_space<vmem>>) attributes {dimension_semantics = [#tpu.dimension_semantics<parallel>, #tpu.dimension_semantics<arbitrary>], iteration_bounds = array<i64: 2, 1>, scalar_prefetch = 0 : i64, scratch_operands = 0 : i64, tpu.core_type = #tpu.core_type<tc>, window_params = [{transform_indices = @transform_0, window_bounds = array<i64: 8, 48>}, {transform_indices = @transform_1, window_bounds = array<i64: 8, 48>}, {transform_indices = @transform_2, window_bounds = array<i64: 8, 1>}, {pipeline_mode = #tpu.pipeline_mode<synchronous>, transform_indices = @transform_3, window_bounds = array<i64: 2, 8>}, {pipeline_mode = #tpu.pipeline_mode<synchronous>, transform_indices = @transform_4, window_bounds = array<i64: 48, 48>}, {transform_indices = @transform_5, window_bounds = array<i64: 1, 2, 48>}, {transform_indices = @transform_6, window_bounds = array<i64: 1, 2, 48>}, {transform_indices = @transform_7, window_bounds = array<i64: 1, 2, 1>}]} {
    %c0_i32 = arith.constant 0 : i32
    %0 = arith.cmpi eq, %arg1, %c0_i32 : i32
    %1 = arith.extui %0 : i1 to i32
    %c0_i32_0 = arith.constant 0 : i32
    %2 = arith.cmpi ne, %1, %c0_i32_0 : i32
    scf.if %2 {
      %cst_31 = arith.constant 0.000000e+00 : f32
      %37 = vector.broadcast %cst_31 : f32 to vector<2x48xf32>
      %c0_32 = arith.constant 0 : index
      %c0_33 = arith.constant 0 : index
      %c0_34 = arith.constant 0 : index
      %38 = vector.load %arg7[%c0_32, %c0_33, %c0_34] : memref<1x2x48xf32, #tpu.memory_space<vmem>>, vector<1x2x48xf32>
      %39 = vector.shape_cast %38 : vector<1x2x48xf32> to vector<2x48xf32>
      %40 = vector.shape_cast %37 : vector<2x48xf32> to vector<1x2x48xf32>
      tpu.vector_store %arg7[%c0_32, %c0_33, %c0_34], %40 {strides = array<i32>} : memref<1x2x48xf32, #tpu.memory_space<vmem>>, vector<1x2x48xf32>,
      %cst_35 = arith.constant 0.000000e+00 : f32
      %41 = vector.broadcast %cst_35 : f32 to vector<2x48xf32>
      %c0_36 = arith.constant 0 : index
      %c0_37 = arith.constant 0 : index
      %c0_38 = arith.constant 0 : index
      %42 = vector.load %arg8[%c0_36, %c0_37, %c0_38] : memref<1x2x48xf32, #tpu.memory_space<vmem>>, vector<1x2x48xf32>
      %43 = vector.shape_cast %42 : vector<1x2x48xf32> to vector<2x48xf32>
      %44 = vector.shape_cast %41 : vector<2x48xf32> to vector<1x2x48xf32>
      tpu.vector_store %arg8[%c0_36, %c0_37, %c0_38], %44 {strides = array<i32>} : memref<1x2x48xf32, #tpu.memory_space<vmem>>, vector<1x2x48xf32>,
      %cst_39 = arith.constant 0.000000e+00 : f32
      %45 = vector.broadcast %cst_39 : f32 to vector<2x1xf32>
      %c0_40 = arith.constant 0 : index
      %c0_41 = arith.constant 0 : index
      %c0_42 = arith.constant 0 : index
      %46 = vector.load %arg9[%c0_40, %c0_41, %c0_42] : memref<1x2x1xf32, #tpu.memory_space<vmem>>, vector<1x2x1xf32>
      %47 = vector.shape_cast %46 : vector<1x2x1xf32> to vector<2x1xf32>
      %48 = vector.shape_cast %45 : vector<2x1xf32> to vector<1x2x1xf32>
      tpu.vector_store %arg9[%c0_40, %c0_41, %c0_42], %48 {strides = array<i32>} : memref<1x2x1xf32, #tpu.memory_space<vmem>>, vector<1x2x1xf32>,
    } else {
    }
    %c0 = arith.constant 0 : index
    %c0_1 = arith.constant 0 : index
    %3 = vector.load %arg2[%c0, %c0_1] : memref<8x48xf32, #tpu.memory_space<vmem>>, vector<8x48xf32>
    %c0_2 = arith.constant 0 : index
    %c0_3 = arith.constant 0 : index
    %4 = vector.load %arg3[%c0_2, %c0_3] : memref<8x48xf32, #tpu.memory_space<vmem>>, vector<8x48xf32>
    %c0_4 = arith.constant 0 : index
    %c0_5 = arith.constant 0 : index
    %5 = vector.load %arg4[%c0_4, %c0_5] : memref<8x1xf32, #tpu.memory_space<vmem>>, vector<8x1xf32>
    %c0_6 = arith.constant 0 : index
    %c0_7 = arith.constant 0 : index
    %6 = vector.load %arg5[%c0_6, %c0_7] : memref<2x8xf32, #tpu.memory_space<vmem>>, vector<2x8xf32>
    %7 = arith.subf %3, %4 : vector<8x48xf32>
    %8 = arith.mulf %7, %7 : vector<8x48xf32>
    %c0_8 = arith.constant 0 : index
    %c0_9 = arith.constant 0 : index
    %9 = vector.load %arg6[%c0_8, %c0_9] : memref<48x48xf32, #tpu.memory_space<vmem>>, vector<48x48xf32>
    %cst = arith.constant dense<0.000000e+00> : vector<8x48xf32>
    %10 = tpu.matmul %7, %9, %cst {dimension_numbers = #tpu.dot_dimension_numbers<[1], [0], [0], [1], [0, 0, 1, 1], [], []>} : vector<8x48xf32>, vector<48x48xf32>, vector<8x48xf32> -> vector<8x48xf32>
    %11 = arith.mulf %10, %10 : vector<8x48xf32>
    %12 = vector.broadcast %5 : vector<8x1xf32> to vector<8x48xf32>
    %13 = arith.mulf %8, %12 : vector<8x48xf32>
    %14 = vector.broadcast %5 : vector<8x1xf32> to vector<8x48xf32>
    %15 = arith.mulf %11, %14 : vector<8x48xf32>
    %c0_10 = arith.constant 0 : index
    %c0_11 = arith.constant 0 : index
    %c0_12 = arith.constant 0 : index
    %16 = vector.load %arg7[%c0_10, %c0_11, %c0_12] : memref<1x2x48xf32, #tpu.memory_space<vmem>>, vector<1x2x48xf32>
    %17 = vector.shape_cast %16 : vector<1x2x48xf32> to vector<2x48xf32>
    %cst_13 = arith.constant dense<0.000000e+00> : vector<2x48xf32>
    %18 = tpu.matmul %6, %13, %cst_13 {dimension_numbers = #tpu.dot_dimension_numbers<[1], [0], [0], [1], [0, 0, 1, 1], [], []>} : vector<2x8xf32>, vector<8x48xf32>, vector<2x48xf32> -> vector<2x48xf32>
    %19 = arith.addf %17, %18 : vector<2x48xf32>
    %c0_14 = arith.constant 0 : index
    %c0_15 = arith.constant 0 : index
    %c0_16 = arith.constant 0 : index
    %20 = vector.load %arg7[%c0_14, %c0_15, %c0_16] : memref<1x2x48xf32, #tpu.memory_space<vmem>>, vector<1x2x48xf32>
    %21 = vector.shape_cast %20 : vector<1x2x48xf32> to vector<2x48xf32>
    %22 = vector.shape_cast %19 : vector<2x48xf32> to vector<1x2x48xf32>
    tpu.vector_store %arg7[%c0_14, %c0_15, %c0_16], %22 {strides = array<i32>} : memref<1x2x48xf32, #tpu.memory_space<vmem>>, vector<1x2x48xf32>,
    %c0_17 = arith.constant 0 : index
    %c0_18 = arith.constant 0 : index
    %c0_19 = arith.constant 0 : index
    %23 = vector.load %arg8[%c0_17, %c0_18, %c0_19] : memref<1x2x48xf32, #tpu.memory_space<vmem>>, vector<1x2x48xf32>
    %24 = vector.shape_cast %23 : vector<1x2x48xf32> to vector<2x48xf32>
    %cst_20 = arith.constant dense<0.000000e+00> : vector<2x48xf32>
    %25 = tpu.matmul %6, %15, %cst_20 {dimension_numbers = #tpu.dot_dimension_numbers<[1], [0], [0], [1], [0, 0, 1, 1], [], []>} : vector<2x8xf32>, vector<8x48xf32>, vector<2x48xf32> -> vector<2x48xf32>
    %26 = arith.addf %24, %25 : vector<2x48xf32>
    %c0_21 = arith.constant 0 : index
    %c0_22 = arith.constant 0 : index
    %c0_23 = arith.constant 0 : index
    %27 = vector.load %arg8[%c0_21, %c0_22, %c0_23] : memref<1x2x48xf32, #tpu.memory_space<vmem>>, vector<1x2x48xf32>
    %28 = vector.shape_cast %27 : vector<1x2x48xf32> to vector<2x48xf32>
    %29 = vector.shape_cast %26 : vector<2x48xf32> to vector<1x2x48xf32>
    tpu.vector_store %arg8[%c0_21, %c0_22, %c0_23], %29 {strides = array<i32>} : memref<1x2x48xf32, #tpu.memory_space<vmem>>, vector<1x2x48xf32>,
    %c0_24 = arith.constant 0 : index
    %c0_25 = arith.constant 0 : index
    %c0_26 = arith.constant 0 : index
    %30 = vector.load %arg9[%c0_24, %c0_25, %c0_26] : memref<1x2x1xf32, #tpu.memory_space<vmem>>, vector<1x2x1xf32>
    %31 = vector.shape_cast %30 : vector<1x2x1xf32> to vector<2x1xf32>
    %cst_27 = arith.constant dense<0.000000e+00> : vector<2x1xf32>
    %32 = tpu.matmul %6, %5, %cst_27 {dimension_numbers = #tpu.dot_dimension_numbers<[1], [0], [0], [1], [0, 0, 1, 1], [], []>} : vector<2x8xf32>, vector<8x1xf32>, vector<2x1xf32> -> vector<2x1xf32>
    %33 = arith.addf %31, %32 : vector<2x1xf32>
    %c0_28 = arith.constant 0 : index
    %c0_29 = arith.constant 0 : index
    %c0_30 = arith.constant 0 : index
    %34 = vector.load %arg9[%c0_28, %c0_29, %c0_30] : memref<1x2x1xf32, #tpu.memory_space<vmem>>, vector<1x2x1xf32>
    %35 = vector.shape_cast %34 : vector<1x2x1xf32> to vector<2x1xf32>
    %36 = vector.shape_cast %33 : vector<2x1xf32> to vector<1x2x1xf32>
    tpu.vector_store %arg9[%c0_28, %c0_29, %c0_30], %36 {strides = array<i32>} : memref<1x2x1xf32, #tpu.memory_space<vmem>>, vector<1x2x1xf32>,
    return
  }
  func.func @transform_0(%arg0: i32, %arg1: i32) -> (i32, i32) {
    %c1_i32 = arith.constant 1 : i32
    %0 = arith.muli %arg0, %c1_i32 : i32
    %1 = arith.addi %0, %arg1 : i32
    %c0_i32 = arith.constant 0 : i32
    %c0_i32_0 = arith.constant 0 : i32
    return %1, %c0_i32 : i32, i32
  }
  func.func @transform_1(%arg0: i32, %arg1: i32) -> (i32, i32) {
    %c1_i32 = arith.constant 1 : i32
    %0 = arith.muli %arg0, %c1_i32 : i32
    %1 = arith.addi %0, %arg1 : i32
    %c0_i32 = arith.constant 0 : i32
    %c0_i32_0 = arith.constant 0 : i32
    return %1, %c0_i32 : i32, i32
  }
  func.func @transform_2(%arg0: i32, %arg1: i32) -> (i32, i32) {
    %c1_i32 = arith.constant 1 : i32
    %0 = arith.muli %arg0, %c1_i32 : i32
    %1 = arith.addi %0, %arg1 : i32
    %c0_i32 = arith.constant 0 : i32
    %c0_i32_0 = arith.constant 0 : i32
    return %1, %c0_i32 : i32, i32
  }
  func.func @transform_3(%arg0: i32, %arg1: i32) -> (i32, i32) {
    %c0_i32 = arith.constant 0 : i32
    %c0_i32_0 = arith.constant 0 : i32
    %c0_i32_1 = arith.constant 0 : i32
    return %c0_i32, %c0_i32_0 : i32, i32
  }
  func.func @transform_4(%arg0: i32, %arg1: i32) -> (i32, i32) {
    %c0_i32 = arith.constant 0 : i32
    %c0_i32_0 = arith.constant 0 : i32
    %c0_i32_1 = arith.constant 0 : i32
    return %c0_i32, %c0_i32_0 : i32, i32
  }
  func.func @transform_5(%arg0: i32, %arg1: i32) -> (i32, i32, i32) {
    %c0_i32 = arith.constant 0 : i32
    %c0_i32_0 = arith.constant 0 : i32
    %c0_i32_1 = arith.constant 0 : i32
    return %arg0, %c0_i32, %c0_i32_0 : i32, i32, i32
  }
  func.func @transform_6(%arg0: i32, %arg1: i32) -> (i32, i32, i32) {
    %c0_i32 = arith.constant 0 : i32
    %c0_i32_0 = arith.constant 0 : i32
    %c0_i32_1 = arith.constant 0 : i32
    return %arg0, %c0_i32, %c0_i32_0 : i32, i32, i32
  }
  func.func @transform_7(%arg0: i32, %arg1: i32) -> (i32, i32, i32) {
    %c0_i32 = arith.constant 0 : i32
    %c0_i32_0 = arith.constant 0 : i32
    %c0_i32_1 = arith.constant 0 : i32
    return %arg0, %c0_i32, %c0_i32_0 : i32, i32, i32
  }
}

</mosaic_0001>

<bundles_post_ra>
// kernel: tpu_custom_call.1
= control target key start
LH: loop header
LB: loop body
LE: loop exit
PB: predicated region body
PF: predicated region fallthrough
CT: control target
= control target key end

     0   :  { %s1574_s0 = inlined_call_operand.vmem [shape: f32[16,48], index: 0, kind: input, shape index: {}]   ;;  %s1575_s1 = inlined_call_operand.hbm [shape: f32[16,48], index: 1, kind: input, shape index: {}]   ;;  %s1576_s2 = inlined_call_operand.vmem [shape: f32[16,1], index: 2, kind: input, shape index: {}]   ;;  %s1577_s3 = inlined_call_operand.vmem [shape: f32[2,8], index: 3, kind: input, shape index: {}]   ;;  %s1578_s4 = inlined_call_operand.hbm [shape: f32[48,48], index: 4, kind: input, shape index: {}]   ;;  %s1579_s5 = inlined_call_operand.hbm [shape: f32[2,2,48], index: 5, kind: output, shape index: {0}]   ;;  %s1580_s6 = inlined_call_operand.hbm [shape: f32[2,2,48], index: 6, kind: output, shape index: {1}]   ;;  %s1581_s7 = inlined_call_operand.vmem [shape: f32[2,2,1], index: 7, kind: output, shape index: {2}]  }
   0x1   :  { %1586 = sst [smem:[#allocation17_spill]] %s1578_s4 }
   0x2   :  { %13 = vsyncpa [#allocation3], 0 }
   0x3   :  { %15 = vsyncpa [#allocation3 + $0x1], 0 }
   0x4   :  { %16 = vsyncpa [#allocation6], 0 }
   0x5   :  { %17 = vsyncpa [#allocation4], 0 }
   0x6   :  { %19 = vsyncpa [#allocation4 + $0x1], 0 }
   0x7   :  { %20 = vsyncpa [#allocation9], 0 }
   0x8   :  { %22 = vsyncpa [#allocation9 + $0x1], 0  ;;  %s1301_s24 = smov 0   ;;  %s1303_s25 = smov 0  }
   0x9   :  { %s1305_s26 = smov 0   ;;  %s1307_s27 = smov 0  }
   0xa   :  { %s1309_s28 = smov 0   ;;  %s1311_s29 = smov 0  }
   0xb LB: > { %1587 = sst [smem:[#allocation14_spill]] %s1246_s28  ;;  %s930_s30 = sadd.s32 4294967295, %s1250_s29   ;;  %s1250_s29 = sphi %s1311_s29, %s28_s29   ;;  %s1246_s28 = sphi %s1309_s28, %s1605_s28   ;;  %s1242_s27 = sphi %s1307_s27, %s1604_s27   ;;  %s1238_s26 = sphi %s1305_s26, %s1608_s26   ;;  %s1234_s25 = sphi %s1303_s25, %s1607_s25   ;;  %s1230_s24 = sphi %s1301_s24, %s1606_s24  }
   0xc   : > { %s931_s8 = sadd.s32 4294967294, %s1250_s29   ;;  %p90_p0 = scmp.ne.s32.totalorder %s1234_s25, %s1230_s24 }
   0xd   : > { %p1335_p1 = scmp.eq.s32.totalorder %s930_s30, 0  ;;  %p1339_p2 = scmp.eq.s32.totalorder %s930_s30, 1 }
   0xe   : > { %p190_p3 = scmp.eq.s32.totalorder %s931_s8, 1  ;;  %p932_p5 = scmp.ge.s32.totalorder %s1250_s29, 1 }
   0xf   : > { %p1345_p4 = por %p1335_p1, %p90_p0  ;;  %p249_p7 = scmp.lt.s32.totalorder %s1250_s29, 3 }
  0x10   : > { %p1350_p6 = por %p190_p3, %p90_p0  ;;  %s1252_s14 = smov [#allocation5]  }
  0x11   : > { %s1590_s11 = scalar_select %p1345_p4, 1, 0 }
  0x12   : > { %s1591_s12 = scalar_select %p1350_p6, 1, 0 }
  0x13   : > { %p1355_p8 = pnand %p932_p5, %p249_p7  ;;  %s264_s15 = sshll.u32 %s1252_s14, 4  ;;  %s265_s15 = int_to_ptr.vmem [resolvable:$true] %s264_s15 }
  0x14   : > { %1592 = sst [smem:[#allocation15_spill]] %s1591_s12  ;;  %s40_s17 = sadd.s32 1, %s1246_s28 }
  0x15   : > { %p1008_p9 = pneg %p1355_p8  ;;  %s1093_s18 = scalar_lea.vmem %s265_s15, 768 }
  0x16   : > { %p1094_p13 = scmp.ne.s32.totalorder %s265_s15, %s1093_s18  ;;  %p1101_p5 = scmp.lt.s32.totalorder %s265_s15, %s265_s15 }
  0x17   : > { %p1364_p11 = pnand %p1008_p9, %p1335_p1  ;;  %p1102_p7 = scmp.lt.s32.totalorder %s1093_s18, %s1093_s18 }
  0x19   : > { %p1084_p12 = pneg %p1364_p11  ;;  %p1103_p6 = por %p1102_p7, %p1101_p5 }
  0x1b   : > { %p1096_p0 = pnand %p1094_p13, %p1084_p12 }
  0x1d   : > { %p1097_p3 = pneg %p1096_p0 }
  0x1f   : > { %p1104_p4 = pnand %p1103_p6, %p1097_p3 }
  0x21   : > { %1107 = shalt.err (!%p1104_p4)
}
  0x22   : > { %s1253_s19 = smov 128   ;;  %s1254_s20 = smov 8  }
  0x23   : > { %s1595_s4 = sld [smem:[#allocation17_spill]]  ;;  %p42_p6 = scmp.ge.s32.totalorder %s40_s17, 2 }
  0x24   : > { %s77_s23 = sadd.s32 1, %s1238_s26  ;;  %p84_p4 = scmp.ne.s32.totalorder %s1238_s26, %s1234_s25 }
  0x25   : > { %p85_p9 = scmp.eq.s32.totalorder %s1250_s29, 0  ;;  %s1610_s17 = smov (%p42_p6, %s40_s17), 0 }
  0x26   : > { %1596 = sst [smem:[#allocation16_spill]] %s1610_s17  ;;  %p1388_p13 = por %p1339_p2, %p84_p4 }
  0x27   : > { %p1382_p12 = por %p85_p9, %p84_p4  ;;  %s74_s14 = ssub.s32 %s1246_s28, %s1610_s17 }
  0x28   : > { %p1024_p0 = scmp.lt.s32.totalorder %s1250_s29, 2 }
  0x29   : > { %1011 = dma.hbm_to_vmem [thread:$0]  (!%p1364_p11), %s1595_s4, 768, %s265_s15, [#allocation6], %s1253_s19, %s1253_s19, %s1254_s20  }
  0x2a   : > { %p75_p11 = scmp.eq.s32.totalorder %s74_s14, 0  ;;  %s287_s15 = sand.u32 1, %s1238_s26  }
  0x2b   : > { %s935_s16 = sshll.u32 %s287_s15, 3  ;;  %s936_s19 = sshll.u32 %s1246_s28, 7 }
  0x2c   : > { %s1397_s18 = scalar_select %p75_p11, %s1238_s26, %s77_s23  }
  0x2d   : > { %s297_s22 = scalar_lea.hbm %s1575_s1, %s936_s19  ;;  %s291_s4 = scalar_lea.vmem [#allocation2], %s935_s16 }
  0x2e   : > { %s299_s12 = sshll.u32 %s291_s4, 4  ;;  %p1405_p2 = pnand %p1024_p0, %p1382_p12  ;;  %s300_s12 = int_to_ptr.vmem [resolvable:$true] %s299_s12 }
  0x2f   : > { %s288_s17 = scalar_lea.sflag [#allocation3], %s287_s15  ;;  %s1121_s14 = scalar_lea.vmem %s300_s12, 128 }
  0x30   : > { %p1110_p3 = pneg %p1405_p2  ;;  %p1122_p5 = scmp.ne.s32.totalorder %s300_s12, %s1121_s14 }
  0x31   : > { %s1255_s23 = smov [#allocation2]  }
  0x32   : > { %p1124_p7 = pnand %p1122_p5, %p1110_p3  ;;  %s1126_s28 = sshll.u32 %s1255_s23, 4  ;;  %s1127_s28 = int_to_ptr.vmem [resolvable:$false] %s1126_s28 }
  0x33   : > { %s1128_s19 = scalar_lea.vmem %s1127_s28, 256  ;;  %p1129_p4 = scmp.lt.s32.totalorder %s300_s12, %s1127_s28 }
  0x34   : > { %p1125_p6 = pneg %p1124_p7  ;;  %p1130_p9 = scmp.lt.s32.totalorder %s1128_s19, %s1121_s14 }
  0x36   : > { %p1131_p11 = por %p1130_p9, %p1129_p4 }
  0x38   : > { %p1132_p10 = pnand %p1131_p11, %p1125_p6 }
  0x3a   : > { %1135 = shalt.err (!%p1132_p10)
}
  0x3b   : > { %1015 = dma.hbm_to_vmem [thread:$0]  (!%p1405_p2), %s297_s22, 128, %s300_s12, %s288_s17  }
  0x3c   : > { %317 = sbr.rel (%p1355_p8) target bundleno = 491 (0x1eb), region = 40  ;;  %s1416_s4 = sand.u32 (!%p1355_p8), 1, %s1234_s25  }
  0x3d   : > { %s938_s30 = sshll.u32 (!%p1355_p8), %s1416_s4, 3  ;;  %s320_s15 = scalar_lea.sflag (!%p1355_p8), [#allocation3], %s1416_s4 }
  0x3e   : > { %s1420_s16 = scalar_lea.vmem (!%p1355_p8), [#allocation2], %s938_s30  ;;  %p1600_p12 = scmp.ne.s32.totalorder (!%p1355_p8), %s1590_s11, 0 }
  0x41   : > { %1213 = dma.done.wait (%p1600_p12), %s320_s15, 128  }
  0x42   : > { %1215 = vsyncadd (%p1600_p12), %s320_s15, 4294967168 }
  0x43   : > { %1217 = dma.done.wait (%p1335_p1), [#allocation6], 768  }
  0x44   : > { %1219 = vsyncadd (%p1335_p1), [#allocation6], 4294966528  ;;  %p378_p8 = scmp.lt.s32.totalorder %s1242_s27, 1  ;;  %v1256_v0 = vmov 0.0   ;;  %vm1257_vm0 = vmmov 0   ;;  %v1258_v1 = vmov 0  }
  0x45   : > { %968 = vmatprep.subr.mxu0 %v1256_v0  ;;  %980 = vmatprep.mubr.msk.f32.mxu0 %vm1257_vm0, %v1256_v0  ;;  %v414_v2 = vld [vmem:[#allocation5 + $0x28] sm:$0xff]  ;;  %v413_v3 = vld [vmem:[#allocation5 + $0x20] sm:$0xff]  ;;  %v412_v4 = vld [vmem:[#allocation5 + $0x18] sm:$0xff]  ;;  %vm415_vm1 = vcmask 392192   ;;  %s940_s22 = sshll.u32 %s1416_s4, 1  ;;  %vm398_vm2 = vcmask 386048  }
  0x46   : > { %s1435_s28 = scalar_select %p378_p8, %s1242_s27, 1  ;;  %1081 = vset.pattern.permute.xlu0 %v1258_v1  ;;  %983 = vmatprep.subr.mxu1 %v1256_v0  ;;  %v411_v6 = vld [vmem:[#allocation5 + $0x10] sm:$0xff]  ;;  %v410_v9 = vld [vmem:[#allocation5 + $0x8] sm:$0xff]  ;;  %v409_v10 = vld [vmem:[#allocation5] sm:$0xff]  ;;  %vm498_vm3 = vcmask 64512   ;;  %vm401_vm4 = vcmask 1024  }
  0x47   : > { %985 = vmatprep.mubr.msk.f32.mxu1 %vm1257_vm0, %v1256_v0  ;;  %969 = vmatpush3.msra.mxu0 %v414_v2  ;;  %v404_v8 = vld [vmem:[%s1420_s16] sm:$0xff]  ;;  %s1454_s10 = scalar_lea.vmem [#allocation7], %s940_s22  ;;  %s1466_s19 = scalar_lea.vmem [#allocation8], %s940_s22 }
  0x48   : > { %s942_s9 = sshll.u32 %s1435_s28, 3  ;;  %970 = vmatprep.subr.mxu0 %v1256_v0  ;;  %399 = vst.msk [vmem:[%s1454_s10] sm:$0x3] %vm398_vm2, %v1256_v0  ;;  %v406_v15 = vld [vmem:[%s1577_s3] sm:$0x3]  ;;  %s944_s30 = sshll.u32 %s1435_s28, 1 }
  0x49   : > { %s388_s13 = scalar_lea.vmem %s1576_s2, %s942_s9  ;;  %s381_s21 = scalar_lea.vmem %s1574_s0, %s942_s9  ;;  %971 = vmatpush3.msra.mxu0 %v413_v3  ;;  %400 = vst.msk [vmem:[%s1466_s19] sm:$0x3] %vm398_vm2, %v1256_v0 }
  0x4a   : > { %v405_v5 = vld [vmem:[%s388_s13] sm:$0xff]  ;;  %972 = vmatprep.subr.mxu0 %v1256_v0  ;;  %s1480_s9 = scalar_lea.vmem %s1581_s7, %s944_s30  ;;  %s951_s11 = sshll.u32 %s1242_s27, 5 }
  0x4b   : > { %492 = vperm.xlu0 %1081, %v405_v5   ;;  %973 = vmatpush3.msra.mxu0 %v412_v4  ;;  %v403_v7 = vld [vmem:[%s381_s21] sm:$0xff]  ;;  %402 = vst.msk [vmem:[%s1480_s9] sm:$0x3] %vm401_vm4, %v1256_v0  ;;  %s745_s12 = sshll.u32 %s1454_s10, 4  ;;  %s1493_s28 = scalar_lea.hbm %s1579_s5, %s951_s11  ;;  %s746_s12 = int_to_ptr.vmem [resolvable:$true] %s745_s12 }
  0x4c   : > { %974 = vmatprep.subr.mxu0 %v1256_v0  ;;  %v407_v11 = vsub.f32 %v403_v7, %v404_v8  ;;  %s723_s20 = scalar_lea.sflag [#allocation4], %s1416_s4  ;;  %s1136_s21 = scalar_lea.vmem %s746_s12, 32 }
  0x4d   : > { %975 = vmatpush3.msra.mxu0 %v411_v6  ;;  %p1137_p1 = scmp.ne.s32.totalorder %s746_s12, %s1136_s21  ;;  %s1259_s22 = smov [#allocation7]  }
  0x4e   : > { %976 = vmatprep.subr.mxu0 %v1256_v0  ;;  %v408_v12 = vmul.f32 %v407_v11, %v407_v11  ;;  %s1140_s14 = sshll.u32 %s1259_s22, 4  ;;  %s1141_s14 = int_to_ptr.vmem [resolvable:$false] %s1140_s14 }
  0x4f   : > { %977 = vmatpush3.msra.mxu0 %v410_v9  ;;  %v497_v20 = vld [vmem:[%s1454_s10] sm:$0x3]  ;;  %p1138_p10 = pnand %p1137_p1, %p1388_p13  ;;  %s1142_s23 = scalar_lea.vmem %s1141_s14, 64 }
  0x50   : > { %978 = vmatprep.subr.mxu0 %v1256_v0  ;;  %p1143_p2 = scmp.lt.s32.totalorder %s746_s12, %s1141_s14  ;;  %p1144_p3 = scmp.lt.s32.totalorder %s1142_s23, %s1136_s21 }
  0x51   : > { %979 = vmatpush3.msra.mxu0 %v409_v10  ;;  %p1139_p0 = pneg %p1138_p10 }
  0x52   : > { %981 = vmatmul.mubr.msk.f32.vlgmr.msra.gmra.mxu0 %vm415_vm1, %v407_v11  ;;  %p1145_p5 = por %p1144_p3, %p1143_p2 }
  0x54   : > { %p1146_p7 = pnand %p1145_p5, %p1139_p0 }
  0xc6   : > { %v493_v13 = vpop.permute.xlu0 %492 }
  0xc7   : > { %v495_v14 = vmul.f32 %v493_v13, %v408_v12 }
  0xc9   : > { %984 = vmatpush3.msra.mxu1 %v495_v14 }
  0xca   : > { %986 = vmatmul.mubr.msk.f32.vlgmr.msra.gmra.mxu1 %vm498_vm3, %v406_v15  ;;  %988 = vmatprep.subr.mxu1 %v1256_v0 }
  0xcb   : > { %990 = vmatprep.mubr.msk.f32.mxu1 %vm1257_vm0, %v1256_v0 }
 0x112   : > { %v485_v16 = vpop.f32.mrf.mxu0 }
 0x113   : > { %v489_v17 = vmul.f32 %v485_v16, %v485_v16 }
 0x114   : > { %v982_v18 = vpop.f32.mrf.mxu0 }
 0x115   : > { %v496_v19 = vmul.f32 %v493_v13, %v489_v17 }
 0x117   : > { %989 = vmatpush3.msra.mxu1 %v496_v19 }
 0x118   : > { %991 = vmatmul.mubr.msk.f32.vlgmr.msra.gmra.mxu1 %vm498_vm3, %v406_v15  ;;  %993 = vmatprep.subr.mxu1 %v1256_v0 }
 0x119   : > { %994 = vmatpush3.msra.mxu1 %v405_v5  ;;  %995 = vmatprep.mubr.msk.f32.mxu1 %vm1257_vm0, %v1256_v0 }
 0x11c   : > { %996 = vmatmul.mubr.msk.f32.vlgmr.msra.gmra.mxu1 %vm498_vm3, %v406_v15 }
 0x18a   : > { %v568_v21 = vpop.f32.mrf.mxu1 }
 0x18b   : > { %v572_v22 = vadd.f32 %v568_v21, %v497_v20 }
 0x18c   : > { %v987_v23 = vpop.f32.mrf.mxu1 }
 0x18d   : > { %574 = vst.msk [vmem:[%s1454_s10] sm:$0x3] %vm398_vm2, %v572_v22 }
 0x18e   : > { %1149 = shalt.err (!%p1146_p7)
}
 0x18f   : > { %s1150_s10 = scalar_lea.hbm %s1493_s28, 32  ;;  %s1154_s16 = scalar_lea.hbm %s1579_s5, 64 }
 0x190   : > { %p1151_p6 = scmp.ne.s32.totalorder %s1493_s28, %s1150_s10  ;;  %p1155_p11 = scmp.lt.s32.totalorder %s1493_s28, %s1579_s5 }
 0x191   : > { %p1156_p12 = scmp.lt.s32.totalorder %s1154_s16, %s1150_s10 }
 0x192   : > { %p1152_p4 = pnand %p1151_p6, %p1388_p13 }
 0x193   : > { %p1157_p8 = por %p1156_p12, %p1155_p11 }
 0x194   : > { %p1153_p9 = pneg %p1152_p4 }
 0x196   : > { %p1158_p1 = pnand %p1157_p8, %p1153_p9 }
 0x198   : > { %1161 = shalt.err (!%p1158_p1)
}
 0x199   : > { %1004 = dma.vmem_to_hbm [thread:$0]  (%p1388_p13), %s746_s12, 32, %s1493_s28, %s723_s20   ;;  %v575_v24 = vld [vmem:[%s1466_s19] sm:$0x3]  ;;  %v648_v28 = vld [vmem:[%s1480_s9] sm:$0x3] }
 0x19a   : > { %s758_s21 = sshll.u32 %s1466_s19, 4  ;;  %s1521_s23 = scalar_lea.hbm %s1580_s6, %s951_s11  ;;  %s1523_s21 = int_to_ptr.vmem [resolvable:$true] %s758_s21 }
 0x19b   : > { %s728_s12 = scalar_lea.sflag [#allocation9], %s1416_s4  ;;  %s1162_s28 = scalar_lea.vmem %s1523_s21, 32 }
 0x19c   : > { %p1163_p10 = scmp.ne.s32.totalorder %s1523_s21, %s1162_s28  ;;  %s1260_s27 = smov [#allocation8]  }
 0x19d   : > { %s1166_s20 = sshll.u32 %s1260_s27, 4  ;;  %s1167_s20 = int_to_ptr.vmem [resolvable:$false] %s1166_s20 }
 0x19e   : > { %p1164_p0 = pnand %p1163_p10, %p1388_p13  ;;  %s1168_s11 = scalar_lea.vmem %s1167_s20, 64 }
 0x19f   : > { %p1169_p3 = scmp.lt.s32.totalorder %s1523_s21, %s1167_s20  ;;  %p1170_p5 = scmp.lt.s32.totalorder %s1168_s11, %s1162_s28 }
 0x1a0   : > { %p1165_p2 = pneg %p1164_p0 }
 0x1a1   : > { %p1171_p7 = por %p1170_p5, %p1169_p3 }
 0x1a3   : > { %p1172_p6 = pnand %p1171_p7, %p1165_p2 }
 0x1d8   : > { %v642_v25 = vpop.f32.mrf.mxu1 }
 0x1d9   : > { %v646_v26 = vadd.f32 %v642_v25, %v575_v24 }
 0x1da   : > { %v992_v27 = vpop.f32.mrf.mxu1 }
 0x1db   : > { %647 = vst.msk [vmem:[%s1466_s19] sm:$0x3] %vm398_vm2, %v646_v26 }
 0x1dc   : > { %v715_v29 = vpop.f32.mrf.mxu1 }
 0x1dd   : > { %1175 = shalt.err (!%p1172_p6)
}
 0x1de   : > { %s1176_s19 = scalar_lea.hbm %s1521_s23, 32  ;;  %s1180_s30 = scalar_lea.hbm %s1580_s6, 64 }
 0x1df   : > { %p1177_p4 = scmp.ne.s32.totalorder %s1521_s23, %s1176_s19  ;;  %p1181_p12 = scmp.lt.s32.totalorder %s1521_s23, %s1580_s6 }
 0x1e0   : > { %p1182_p8 = scmp.lt.s32.totalorder %s1180_s30, %s1176_s19 }
 0x1e1   : > { %p1178_p9 = pnand %p1177_p4, %p1388_p13 }
 0x1e2   : > { %p1183_p1 = por %p1182_p8, %p1181_p12 }
 0x1e3   : > { %p1179_p11 = pneg %p1178_p9 }
 0x1e5   : > { %p1184_p10 = pnand %p1183_p1, %p1179_p11 }
 0x1e7   : > { %1187 = shalt.err (!%p1184_p10)
}
 0x1e8   : > { %1005 = dma.vmem_to_hbm [thread:$0]  (%p1388_p13), %s1523_s21, 32, %s1521_s23, %s728_s12   ;;  %v719_v30 = vadd.f32 %v715_v29, %v648_v28  ;;  %v997_v31 = vpop.f32.mrf.mxu1 }
 0x1ea   : > { %721 = vst.msk [vmem:[%s1480_s9] sm:$0x3] %vm401_vm4, %v719_v30 }
 0x1eb PF: > { %s1601_s13 = sld [smem:[#allocation15_spill]]  ;;  %s773_s17 = sand.u32 1, %s1230_s24  }
 0x1ec   : > { %p1603_p2 = scmp.ge.s32.totalorder %s1250_s29, 2  ;;  %s774_s22 = scalar_lea.sflag [#allocation4], %s773_s17 }
 0x1f1   : > { %p1602_p0 = scmp.ne.s32.totalorder %s1601_s13, 0 }
 0x1f3   : > { %p1017_p3 = pnand %p1603_p2, %p1602_p0 }
 0x1f5   : > { %p1018_p5 = pneg %p1017_p3 }
 0x1f7   : > { %1221 = dma.done.wait (%p1018_p5), %s774_s22, 32  }
 0x1f8   : > { %1223 = vsyncadd (%p1018_p5), %s774_s22, 4294967264  ;;  %s783_s8 = scalar_lea.sflag [#allocation9], %s773_s17 }
 0x1f9   : > { %1225 = dma.done.wait (%p1018_p5), %s783_s8, 32  }
 0x1fa   : > { %1227 = vsyncadd (%p1018_p5), %s783_s8, 4294967264  ;;  %s28_s29 = sadd.s32 1, %s1250_s29   ;;  %s1604_s27 = sld [smem:[#allocation14_spill]] }
 0x1fb   : > { %p25_p13 = scmp.ge.s32.totalorder %s28_s29, 4   ;;  %s1605_s28 = sld [smem:[#allocation16_spill]] }
 0x1fc   : > { %s1606_s24 = smov %s1234_s25  ;;  %s1607_s25 = smov %s1238_s26 }
 0x1fd   : > { %s1608_s26 = smov %s1397_s18  ;;  %27 = sbr.rel (!%p25_p13) target bundleno = 11 (0xb), region = 128 }
 0x202   :  { %795 = vsyncpa [#allocation3], 1 }
 0x203   :  { %797 = vsyncpa [#allocation3 + $0x1], 1 }
 0x204   :  { %798 = vsyncpa [#allocation6], 1 }
 0x205   :  { %799 = vsyncpa [#allocation4], 1 }
 0x206   :  { %801 = vsyncpa [#allocation4 + $0x1], 1 }
 0x207   :  { %802 = vsyncpa [#allocation9], 1 }
 0x208   :  { %804 = vsyncpa [#allocation9 + $0x1], 1 }

</bundles_post_ra>
